<compile_context>
chip_gen: v7x
topology: tpu7x:2x2x1
jax: 0.10.0
libtpu: 0.0.40
codegen_flags: <defaults>
</compile_context>

<pallas_src>
import functools
import numpy as np

import jax
import jax.numpy as jnp
from jax import lax
from jax.experimental import pallas as pl
from jax.experimental.pallas import tpu as pltpu

EPS = 1e-6


def _softplus(x):
    # numerically-stable softplus, shared by kernel and reference
    return jnp.log(1.0 + jnp.exp(-jnp.abs(x))) + jnp.maximum(x, 0.0)


def _sigmoid(x):
    return 1.0 / (1.0 + jnp.exp(-x))


def _fast_recip(x):
    # EUP approximate reciprocal seed + one Newton step: keeps f32 accuracy
    # while staying off the VPU divide path (feedback #6).
    r = pl.reciprocal(x, approx=True)
    return r * (2.0 - x * r)


def _tile_lanes(x, reps):
    # jnp.tile(x, (1, reps)) built purely from pairwise lane concats
    # (Mosaic-friendly; copies of x, so ordering of pieces is irrelevant).
    pieces = []
    cur, n = x, reps
    while n > 0:
        if n & 1:
            pieces.append(cur)
        n >>= 1
        if n:
            cur = jnp.concatenate([cur, cur], axis=-1)
    return pieces[0] if len(pieces) == 1 else jnp.concatenate(pieces, axis=-1)


def _roll_lanes(x, d):
    # out[:, m] = x[:, (m + d) % M]  for a static integer d (XLU lane rotation).
    M = x.shape[-1]
    d = d % M
    if d == 0:
        return x
    return jnp.concatenate([x[:, d:], x[:, :d]], axis=-1)


# ----------------------------------------------------------------------------
# Pallas kernel: processes one TB-row batch block per grid step.
# ----------------------------------------------------------------------------
def _static_head_kernel(hidden_ref, mem_ref, wf_ref, bf_ref, exp_ref, gat_ref,
                        wl_out_ref, mem_out_ref,
                        *, num_heads, mem_hei, mem_wid, num_shifts):
    H, M, W, S = num_heads, mem_hei, mem_wid, num_shifts

    # fused-projection column offsets (must match the wrapper's concat order)
    o_key = 0
    o_beta = o_key + H * W
    o_gate = o_beta + H
    o_shift = o_gate + H
    o_gamma = o_shift + H * S
    o_erase = o_gamma + H
    o_add = o_erase + H * W

    h = hidden_ref[...]                     # (TB, D)
    mem = mem_ref[...]                      # (TB, M*W)  lane-dense memory
    TB = h.shape[0]

    # ---- single fused MXU projection for all per-head linears (feedback #2) --
    proj = jnp.dot(h, wf_ref[...], preferred_element_type=jnp.float32) + bf_ref[...]

    # slab nonlinearities, vectorized over batch x heads (feedback #7)
    key_all = jnp.tanh(proj[:, o_key:o_key + H * W])          # (TB, H*W)
    beta_all = _softplus(proj[:, o_beta:o_beta + H])           # (TB, H)
    gate_all = _sigmoid(proj[:, o_gate:o_gate + H])            # (TB, H)
    shift_all = proj[:, o_shift:o_shift + H * S]               # (TB, H*S)
    gamma_all = 1.0 + _softplus(proj[:, o_gamma:o_gamma + H])  # (TB, H)
    erase_all = _sigmoid(proj[:, o_erase:o_erase + H * W])     # (TB, H*W)
    add_all = jnp.tanh(proj[:, o_add:o_add + H * W])           # (TB, H*W)

    E = exp_ref[...]   # (M, M*W): E[m, m*W + w] = 1  (replicate row m over its W lanes)
    G = gat_ref[...]   # (M*W, M): E^T                (segment-sum groups of W lanes)

    # hoisted memory row norms -> inverse sqrt (feedback #6)
    mnsq = jnp.dot(mem * mem, G, preferred_element_type=jnp.float32) + EPS    # (TB, M)
    inv_mn = lax.rsqrt(mnsq)

    # wl_prev == torch.eye(1, mem_hei): one-hot at slot 0, same for every head
    wl_prev = (lax.broadcasted_iota(jnp.int32, (TB, M), 1) == 0).astype(jnp.float32)

    keep = jnp.ones_like(mem)       # prod_h (1 - wl_h (x) erase_h), lane-dense
    add_acc = jnp.zeros_like(mem)
    wl_heads = []

    for hh in range(H):             # static loop over a small head count
        key_h = key_all[:, hh * W:(hh + 1) * W]        # (TB, W)
        erase_h = erase_all[:, hh * W:(hh + 1) * W]    # (TB, W)
        add_h = add_all[:, hh * W:(hh + 1) * W]        # (TB, W)
        beta_h = beta_all[:, hh:hh + 1]                # (TB, 1)
        gate_h = gate_all[:, hh:hh + 1]                # (TB, 1)
        gamma_h = gamma_all[:, hh:hh + 1]              # (TB, 1)
        sh_l = shift_all[:, hh * S:(hh + 1) * S]       # (TB, S)

        # softmax over the S allowed shifts
        sh_l = sh_l - jnp.max(sh_l, axis=-1, keepdims=True)
        se = jnp.exp(sh_l)
        shift_w = se * _fast_recip(jnp.sum(se, axis=-1, keepdims=True))

        # ---- content focus: cosine similarity, lane-dense on VPU + one matmul
        key_rep = _tile_lanes(key_h, M)                                     # (TB, M*W)
        num = jnp.dot(key_rep * mem, G, preferred_element_type=jnp.float32)  # (TB, M)
        inv_kn = lax.rsqrt(jnp.sum(key_h * key_h, axis=-1, keepdims=True) + EPS)
        Ksim = num * inv_kn * inv_mn                                        # (TB, M)

        wc_l = Ksim * beta_h
        wc_l = wc_l - jnp.max(wc_l, axis=-1, keepdims=True)
        wce = jnp.exp(wc_l)
        wc = wce * _fast_recip(jnp.sum(wce, axis=-1, keepdims=True))        # (TB, M)

        # ---- location focus: interpolate, circular shift, sharpen ----------
        wg = wc * gate_h + wl_prev * (1.0 - gate_h)                          # (TB, M)

        # circular correlation: ws[m] = sum_k shift[k] * wg[(m + k - S//2) % M]
        # via XLU lane rotations (replaces the one-hot shift-basis matmuls, #4)
        ws = jnp.zeros_like(wg)
        for k in range(S):
            ws = ws + shift_w[:, k:k + 1] * _roll_lanes(wg, k - S // 2)

        ws = jnp.maximum(ws, 1e-30)      # guard log() against underflow (review note)
        wp = jnp.exp(gamma_h * jnp.log(ws))
        wl = wp * _fast_recip(jnp.sum(wp, axis=-1, keepdims=True))           # (TB, M)
        wl_heads.append(wl)

        # ---- erase / add write contributions, lane-dense (feedback #3, #5) --
        # one 0/1 replication matmul spreads wl[b, m] over that row's W lanes;
        # the rest is pure VPU broadcast multiplies (no K=1 MXU outer products).
        wl_rep = jnp.dot(wl, E, preferred_element_type=jnp.float32)          # (TB, M*W)
        keep = keep * (1.0 - wl_rep * _tile_lanes(erase_h, M))
        add_acc = add_acc + wl_rep * _tile_lanes(add_h, M)

    wl_out_ref[...] = (jnp.concatenate(wl_heads, axis=-1)
                       if H > 1 else wl_heads[0])                            # (TB, H*M)
    mem_out_ref[...] = mem * keep + add_acc                                  # (TB, M*W)


# ----------------------------------------------------------------------------
# Wrapper
# ----------------------------------------------------------------------------
def static_head_forward(hidden, memory, params, *, num_heads, mem_hei, mem_wid,
                        num_allowed_shifts, batch_block=256):
    """Returns (wl_curr [B,H,M], updated_memory [B,M,W])."""
    B, D = hidden.shape
    H, M, W, S = num_heads, mem_hei, mem_wid, num_allowed_shifts
    MW = M * W
    F = H * (3 * W + 3 + S)

    # fuse the seven per-head linears into one weight / bias (feedback #2)
    w_fused = jnp.concatenate(
        [params["wk"], params["wbeta"], params["wgate"], params["wshift"],
         params["wgamma"], params["werase"], params["wadd"]], axis=1)
    b_fused = jnp.concatenate(
        [params["bk"], params["bbeta"], params["bgate"], params["bshift"],
         params["bgamma"], params["berase"], params["badd"]], axis=1)
    assert w_fused.shape == (D, F) and b_fused.shape == (1, F)

    # constant 0/1 expander (M, M*W) and its transpose (segment-sum matrix)
    E = jnp.asarray(np.kron(np.eye(M, dtype=np.float32),
                            np.ones((1, W), np.float32)))     # (M, M*W)
    G = E.T                                                    # (M*W, M)

    # lane-dense memory layout at the kernel boundary (feedback #3)
    mem_flat = memory.reshape(B, MW)

    # batch-blocked grid (feedback #1): TB rows per step.
    # TB guidance: 128 on v5e, 256 on v6e/v7x; tiny B just uses one block.
    TB = B if B <= batch_block else batch_block
    n_blocks = pl.cdiv(B, TB)
    Bp = n_blocks * TB
    hidden_p, mem_p = hidden, mem_flat
    if Bp != B:
        hidden_p = jnp.concatenate(
            [hidden, jnp.zeros((Bp - B, D), hidden.dtype)], axis=0)
        mem_p = jnp.concatenate(
            [mem_flat, jnp.zeros((Bp - B, MW), mem_flat.dtype)], axis=0)

    kernel = functools.partial(
        _static_head_kernel,
        num_heads=H, mem_hei=M, mem_wid=W, num_shifts=S)

    const2 = lambda shape: pl.BlockSpec(shape, lambda i: (0, 0))

    wl_flat, new_mem_flat = pl.pallas_call(
        kernel,
        out_shape=(jax.ShapeDtypeStruct((Bp, H * M), jnp.float32),
                   jax.ShapeDtypeStruct((Bp, MW), jnp.float32)),
        grid_spec=pltpu.PrefetchScalarGridSpec(
            num_scalar_prefetch=0,
            grid=(n_blocks,),
            in_specs=[
                pl.BlockSpec((TB, D), lambda i: (i, 0)),     # hidden
                pl.BlockSpec((TB, MW), lambda i: (i, 0)),    # memory (lane-dense)
                const2((D, F)), const2((1, F)),              # fused linear
                const2((M, MW)), const2((MW, M)),            # expander / gather
            ],
            out_specs=[
                pl.BlockSpec((TB, H * M), lambda i: (i, 0)),  # wl_curr (flat)
                pl.BlockSpec((TB, MW), lambda i: (i, 0)),     # updated memory (flat)
            ],
        ),
        compiler_params=pltpu.CompilerParams(
            dimension_semantics=("parallel",)),
    )(hidden_p, mem_p, w_fused, b_fused, E, G)

    wl = wl_flat[:B].reshape(B, H, M)
    new_mem = new_mem_flat[:B].reshape(B, M, W)
    return wl, new_mem


# ----------------------------------------------------------------------------
# Pure-JAX reference (mirrors the PyTorch forward semantics)
# ----------------------------------------------------------------------------
def static_head_ref(hidden, memory, params, *, num_heads, mem_hei, mem_wid,
                    num_allowed_shifts):
    B = hidden.shape[0]
    H, M, W, S = num_heads, mem_hei, mem_wid, num_allowed_shifts
    lin = lambda w, b: hidden @ w + b

    key = jnp.tanh(lin(params["wk"], params["bk"])).reshape(B, H, W)
    beta = _softplus(lin(params["wbeta"], params["bbeta"])).reshape(B, H, 1)
    gate = _sigmoid(lin(params["wgate"], params["bgate"])).reshape(B, H, 1)
    shift = jax.nn.softmax(
        lin(params["wshift"], params["bshift"]).reshape(B, H, S), axis=-1)
    gamma = (1.0 + _softplus(lin(params["wgamma"], params["bgamma"]))).reshape(B, H, 1)
    erase = _sigmoid(lin(params["werase"], params["berase"])).reshape(B, H, W)
    add = jnp.tanh(lin(params["wadd"], params["badd"])).reshape(B, H, W)

    num = jnp.einsum("bhw,bmw->bhm", key, memory)
    knsq = jnp.sum(key ** 2, -1, keepdims=True) + EPS            # (B,H,1)
    mnsq = jnp.sum(memory ** 2, -1, keepdims=True) + EPS         # (B,M,1)
    den = jnp.sqrt(knsq * jnp.swapaxes(mnsq, 1, 2))              # (B,H,M)
    K = num / (den + EPS)
    wc = jax.nn.softmax(K * beta, axis=-1)

    wl_prev = jnp.zeros((B, H, M), jnp.float32).at[:, :, 0].set(1.0)
    wg = wc * gate + wl_prev * (1.0 - gate)

    idx = (jnp.arange(M)[None, :] + jnp.arange(S)[:, None] - S // 2) % M  # (S,M)
    ws = jnp.einsum("bhk,bhkm->bhm", shift, wg[:, :, idx])
    ws = jnp.maximum(ws, 1e-30)

    wp = ws ** gamma
    wl = wp / jnp.sum(wp, -1, keepdims=True)

    we = wl[:, :, :, None] * erase[:, :, None, :]                # (B,H,M,W)
    keep = jnp.prod(1.0 - we, axis=1)                            # (B,M,W)
    new_mem = memory * keep + jnp.einsum("bhm,bhw->bmw", wl, add)
    return wl, new_mem


# ----------------------------------------------------------------------------
if __name__ == "__main__":
    B, hidden_dim = 2, 32
    H, M, W, S = 2, 16, 8, 3   # num_heads, mem_hei, mem_wid, num_allowed_shifts

    key0 = jax.random.PRNGKey(0)
    ks = jax.random.split(key0, 20)

    def w(k, shape, scale=0.2):
        return (scale * jax.random.normal(k, shape)).astype(jnp.float32)

    params = {
        "wk": w(ks[0], (hidden_dim, H * W)),  "bk": w(ks[1], (1, H * W)),
        "wbeta": w(ks[2], (hidden_dim, H)),   "bbeta": w(ks[3], (1, H)),
        "wgate": w(ks[4], (hidden_dim, H)),   "bgate": w(ks[5], (1, H)),
        "wshift": w(ks[6], (hidden_dim, H * S)), "bshift": w(ks[7], (1, H * S)),
        "wgamma": w(ks[8], (hidden_dim, H)),  "bgamma": w(ks[9], (1, H)),
        "werase": w(ks[10], (hidden_dim, H * W)), "berase": w(ks[11], (1, H * W)),
        "wadd": w(ks[12], (hidden_dim, H * W)),   "badd": w(ks[13], (1, H * W)),
    }

    hidden = jax.random.normal(ks[14], (B, hidden_dim), jnp.float32)
    memory = jax.random.normal(ks[15], (B, M, W), jnp.float32)

    wl, new_mem = static_head_forward(hidden, memory, params,
                                      num_heads=H, mem_hei=M, mem_wid=W,
                                      num_allowed_shifts=S)
    (wl, new_mem) = jax.block_until_ready((wl, new_mem))

    wl_r, new_mem_r = static_head_ref(hidden, memory, params,
                                      num_heads=H, mem_hei=M, mem_wid=W,
                                      num_allowed_shifts=S)
    (wl_r, new_mem_r) = jax.block_until_ready((wl_r, new_mem_r))

    np.testing.assert_allclose(np.asarray(wl), np.asarray(wl_r),
                               rtol=1e-3, atol=1e-4)
    np.testing.assert_allclose(np.asarray(new_mem), np.asarray(new_mem_r),
                               rtol=1e-3, atol=1e-4)
    print("KERNEL_OK")
</pallas_src>

<mosaic_0001>
module attributes {stable_mosaic.version = 11 : i64} {
  func.func @_static_head_kernel(%arg0: i32, %arg1: memref<2x32xf32, #tpu.memory_space<vmem>>, %arg2: memref<2x128xf32, #tpu.memory_space<vmem>>, %arg3: memref<32x60xf32, #tpu.memory_space<vmem>>, %arg4: memref<1x60xf32, #tpu.memory_space<vmem>>, %arg5: memref<16x128xf32, #tpu.memory_space<vmem>>, %arg6: memref<128x16xf32, #tpu.memory_space<vmem>>, %arg7: memref<2x32xf32, #tpu.memory_space<vmem>>, %arg8: memref<2x128xf32, #tpu.memory_space<vmem>>) attributes {dimension_semantics = [#tpu.dimension_semantics<parallel>], iteration_bounds = array<i64: 1>, scalar_prefetch = 0 : i64, scratch_operands = 0 : i64, tpu.core_type = #tpu.core_type<tc>, window_params = [{transform_indices = @transform_0, window_bounds = array<i64: 2, 32>}, {transform_indices = @transform_1, window_bounds = array<i64: 2, 128>}, {pipeline_mode = #tpu.pipeline_mode<synchronous>, transform_indices = @transform_2, window_bounds = array<i64: 32, 60>}, {pipeline_mode = #tpu.pipeline_mode<synchronous>, transform_indices = @transform_3, window_bounds = array<i64: 1, 60>}, {pipeline_mode = #tpu.pipeline_mode<synchronous>, transform_indices = @transform_4, window_bounds = array<i64: 16, 128>}, {pipeline_mode = #tpu.pipeline_mode<synchronous>, transform_indices = @transform_5, window_bounds = array<i64: 128, 16>}, {transform_indices = @transform_6, window_bounds = array<i64: 2, 32>}, {transform_indices = @transform_7, window_bounds = array<i64: 2, 128>}]} {
    %c0 = arith.constant 0 : index
    %c0_0 = arith.constant 0 : index
    %0 = vector.load %arg1[%c0, %c0_0] : memref<2x32xf32, #tpu.memory_space<vmem>>, vector<2x32xf32>
    %c0_1 = arith.constant 0 : index
    %c0_2 = arith.constant 0 : index
    %1 = vector.load %arg2[%c0_1, %c0_2] : memref<2x128xf32, #tpu.memory_space<vmem>>, vector<2x128xf32>
    %c0_3 = arith.constant 0 : index
    %c0_4 = arith.constant 0 : index
    %2 = vector.load %arg3[%c0_3, %c0_4] : memref<32x60xf32, #tpu.memory_space<vmem>>, vector<32x60xf32>
    %cst = arith.constant dense<0.000000e+00> : vector<2x60xf32>
    %3 = tpu.matmul %0, %2, %cst {dimension_numbers = #tpu.dot_dimension_numbers<[1], [0], [0], [1], [0, 0, 1, 1], [], []>} : vector<2x32xf32>, vector<32x60xf32>, vector<2x60xf32> -> vector<2x60xf32>
    %c0_5 = arith.constant 0 : index
    %c0_6 = arith.constant 0 : index
    %4 = vector.load %arg4[%c0_5, %c0_6] : memref<1x60xf32, #tpu.memory_space<vmem>>, vector<1x60xf32>
    %5 = vector.broadcast %4 : vector<1x60xf32> to vector<2x60xf32>
    %6 = arith.addf %3, %5 : vector<2x60xf32>
    %7 = vector.extract_strided_slice %6 {offsets = [0, 0], sizes = [2, 16], strides = [1, 1]} : vector<2x60xf32> to vector<2x16xf32>
    %8 = math.tanh %7 : vector<2x16xf32>
    %9 = vector.extract_strided_slice %6 {offsets = [0, 16], sizes = [2, 2], strides = [1, 1]} : vector<2x60xf32> to vector<2x2xf32>
    %10 = math.absf %9 : vector<2x2xf32>
    %cst_7 = arith.constant 0.000000e+00 : f32
    %11 = vector.broadcast %cst_7 : f32 to vector<2x2xf32>
    %12 = arith.subf %11, %10 : vector<2x2xf32>
    %13 = math.exp %12 : vector<2x2xf32>
    %cst_8 = arith.constant 1.000000e+00 : f32
    %14 = vector.broadcast %cst_8 : f32 to vector<2x2xf32>
    %15 = arith.addf %14, %13 : vector<2x2xf32>
    %16 = math.log %15 : vector<2x2xf32>
    %cst_9 = arith.constant 0.000000e+00 : f32
    %17 = vector.broadcast %cst_9 : f32 to vector<2x2xf32>
    %18 = arith.maximumf %9, %17 : vector<2x2xf32>
    %19 = arith.addf %16, %18 : vector<2x2xf32>
    %20 = vector.extract_strided_slice %6 {offsets = [0, 18], sizes = [2, 2], strides = [1, 1]} : vector<2x60xf32> to vector<2x2xf32>
    %cst_10 = arith.constant 0.000000e+00 : f32
    %21 = vector.broadcast %cst_10 : f32 to vector<2x2xf32>
    %22 = arith.subf %21, %20 : vector<2x2xf32>
    %23 = math.exp %22 : vector<2x2xf32>
    %cst_11 = arith.constant 1.000000e+00 : f32
    %24 = vector.broadcast %cst_11 : f32 to vector<2x2xf32>
    %25 = arith.addf %24, %23 : vector<2x2xf32>
    %cst_12 = arith.constant 1.000000e+00 : f32
    %26 = vector.broadcast %cst_12 : f32 to vector<2x2xf32>
    %27 = arith.divf %26, %25 : vector<2x2xf32>
    %28 = vector.extract_strided_slice %6 {offsets = [0, 20], sizes = [2, 6], strides = [1, 1]} : vector<2x60xf32> to vector<2x6xf32>
    %29 = vector.extract_strided_slice %6 {offsets = [0, 26], sizes = [2, 2], strides = [1, 1]} : vector<2x60xf32> to vector<2x2xf32>
    %30 = math.absf %29 : vector<2x2xf32>
    %cst_13 = arith.constant 0.000000e+00 : f32
    %31 = vector.broadcast %cst_13 : f32 to vector<2x2xf32>
    %32 = arith.subf %31, %30 : vector<2x2xf32>
    %33 = math.exp %32 : vector<2x2xf32>
    %cst_14 = arith.constant 1.000000e+00 : f32
    %34 = vector.broadcast %cst_14 : f32 to vector<2x2xf32>
    %35 = arith.addf %34, %33 : vector<2x2xf32>
    %36 = math.log %35 : vector<2x2xf32>
    %cst_15 = arith.constant 0.000000e+00 : f32
    %37 = vector.broadcast %cst_15 : f32 to vector<2x2xf32>
    %38 = arith.maximumf %29, %37 : vector<2x2xf32>
    %39 = arith.addf %36, %38 : vector<2x2xf32>
    %cst_16 = arith.constant 1.000000e+00 : f32
    %40 = vector.broadcast %cst_16 : f32 to vector<2x2xf32>
    %41 = arith.addf %40, %39 : vector<2x2xf32>
    %42 = vector.extract_strided_slice %6 {offsets = [0, 28], sizes = [2, 16], strides = [1, 1]} : vector<2x60xf32> to vector<2x16xf32>
    %cst_17 = arith.constant 0.000000e+00 : f32
    %43 = vector.broadcast %cst_17 : f32 to vector<2x16xf32>
    %44 = arith.subf %43, %42 : vector<2x16xf32>
    %45 = math.exp %44 : vector<2x16xf32>
    %cst_18 = arith.constant 1.000000e+00 : f32
    %46 = vector.broadcast %cst_18 : f32 to vector<2x16xf32>
    %47 = arith.addf %46, %45 : vector<2x16xf32>
    %cst_19 = arith.constant 1.000000e+00 : f32
    %48 = vector.broadcast %cst_19 : f32 to vector<2x16xf32>
    %49 = arith.divf %48, %47 : vector<2x16xf32>
    %50 = vector.extract_strided_slice %6 {offsets = [0, 44], sizes = [2, 16], strides = [1, 1]} : vector<2x60xf32> to vector<2x16xf32>
    %51 = math.tanh %50 : vector<2x16xf32>
    %c0_20 = arith.constant 0 : index
    %c0_21 = arith.constant 0 : index
    %52 = vector.load %arg5[%c0_20, %c0_21] : memref<16x128xf32, #tpu.memory_space<vmem>>, vector<16x128xf32>
    %c0_22 = arith.constant 0 : index
    %c0_23 = arith.constant 0 : index
    %53 = vector.load %arg6[%c0_22, %c0_23] : memref<128x16xf32, #tpu.memory_space<vmem>>, vector<128x16xf32>
    %54 = arith.mulf %1, %1 : vector<2x128xf32>
    %cst_24 = arith.constant dense<0.000000e+00> : vector<2x16xf32>
    %55 = tpu.matmul %54, %53, %cst_24 {dimension_numbers = #tpu.dot_dimension_numbers<[1], [0], [0], [1], [0, 0, 1, 1], [], []>} : vector<2x128xf32>, vector<128x16xf32>, vector<2x16xf32> -> vector<2x16xf32>
    %cst_25 = arith.constant 9.99999997E-7 : f32
    %56 = vector.broadcast %cst_25 : f32 to vector<2x16xf32>
    %57 = arith.addf %55, %56 : vector<2x16xf32>
    %58 = math.rsqrt %57 : vector<2x16xf32>
    %59 = tpu.iota {dimensions = array<i32: 1>} : vector<2x16xi32>
    %c0_i32 = arith.constant 0 : i32
    %60 = vector.broadcast %c0_i32 : i32 to vector<2x16xi32>
    %61 = arith.cmpi eq, %59, %60 : vector<2x16xi32>
    %62 = arith.extui %61 : vector<2x16xi1> to vector<2x16xi32>
    %63 = arith.sitofp %62 : vector<2x16xi32> to vector<2x16xf32>
    %cst_26 = arith.constant 1.000000e+00 : f32
    %64 = vector.broadcast %cst_26 : f32 to vector<2x128xf32>
    %cst_27 = arith.constant 0.000000e+00 : f32
    %65 = vector.broadcast %cst_27 : f32 to vector<2x128xf32>
    %66 = vector.extract_strided_slice %8 {offsets = [0, 0], sizes = [2, 8], strides = [1, 1]} : vector<2x16xf32> to vector<2x8xf32>
    %67 = vector.extract_strided_slice %49 {offsets = [0, 0], sizes = [2, 8], strides = [1, 1]} : vector<2x16xf32> to vector<2x8xf32>
    %68 = vector.extract_strided_slice %51 {offsets = [0, 0], sizes = [2, 8], strides = [1, 1]} : vector<2x16xf32> to vector<2x8xf32>
    %69 = vector.extract_strided_slice %19 {offsets = [0, 0], sizes = [2, 1], strides = [1, 1]} : vector<2x2xf32> to vector<2x1xf32>
    %70 = vector.extract_strided_slice %27 {offsets = [0, 0], sizes = [2, 1], strides = [1, 1]} : vector<2x2xf32> to vector<2x1xf32>
    %71 = vector.extract_strided_slice %41 {offsets = [0, 0], sizes = [2, 1], strides = [1, 1]} : vector<2x2xf32> to vector<2x1xf32>
    %72 = vector.extract_strided_slice %28 {offsets = [0, 0], sizes = [2, 3], strides = [1, 1]} : vector<2x6xf32> to vector<2x3xf32>
    %cst_28 = arith.constant dense<0xFF800000> : vector<2xf32>
    %73 = vector.multi_reduction <maximumf>, %72, %cst_28 [1] : vector<2x3xf32> to vector<2xf32>
    %74 = vector.shape_cast %73 : vector<2xf32> to vector<2x1xf32>
    %75 = vector.broadcast %74 : vector<2x1xf32> to vector<2x3xf32>
    %76 = arith.subf %72, %75 : vector<2x3xf32>
    %77 = math.exp %76 : vector<2x3xf32>
    %cst_29 = arith.constant dense<0.000000e+00> : vector<2xf32>
    %78 = vector.multi_reduction <add>, %77, %cst_29 [1] : vector<2x3xf32> to vector<2xf32>
    %79 = vector.shape_cast %78 : vector<2xf32> to vector<2x1xf32>
    %80 = tpu.reciprocal %79 {approx = true} : vector<2x1xf32> -> vector<2x1xf32>
    %81 = arith.mulf %79, %80 : vector<2x1xf32>
    %cst_30 = arith.constant 2.000000e+00 : f32
    %82 = vector.broadcast %cst_30 : f32 to vector<2x1xf32>
    %83 = arith.subf %82, %81 : vector<2x1xf32>
    %84 = arith.mulf %80, %83 : vector<2x1xf32>
    %85 = vector.broadcast %84 : vector<2x1xf32> to vector<2x3xf32>
    %86 = arith.mulf %77, %85 : vector<2x3xf32>
    %87 = tpu.concatenate %66, %66 in 1 : vector<2x8xf32>, vector<2x8xf32> -> vector<2x16xf32>
    %88 = tpu.concatenate %87, %87 in 1 : vector<2x16xf32>, vector<2x16xf32> -> vector<2x32xf32>
    %89 = tpu.concatenate %88, %88 in 1 : vector<2x32xf32>, vector<2x32xf32> -> vector<2x64xf32>
    %90 = tpu.concatenate %89, %89 in 1 : vector<2x64xf32>, vector<2x64xf32> -> vector<2x128xf32>
    %91 = arith.mulf %90, %1 : vector<2x128xf32>
    %cst_31 = arith.constant dense<0.000000e+00> : vector<2x16xf32>
    %92 = tpu.matmul %91, %53, %cst_31 {dimension_numbers = #tpu.dot_dimension_numbers<[1], [0], [0], [1], [0, 0, 1, 1], [], []>} : vector<2x128xf32>, vector<128x16xf32>, vector<2x16xf32> -> vector<2x16xf32>
    %93 = arith.mulf %66, %66 : vector<2x8xf32>
    %cst_32 = arith.constant dense<0.000000e+00> : vector<2xf32>
    %94 = vector.multi_reduction <add>, %93, %cst_32 [1] : vector<2x8xf32> to vector<2xf32>
    %95 = vector.shape_cast %94 : vector<2xf32> to vector<2x1xf32>
    %cst_33 = arith.constant 9.99999997E-7 : f32
    %96 = vector.broadcast %cst_33 : f32 to vector<2x1xf32>
    %97 = arith.addf %95, %96 : vector<2x1xf32>
    %98 = math.rsqrt %97 : vector<2x1xf32>
    %99 = vector.broadcast %98 : vector<2x1xf32> to vector<2x16xf32>
    %100 = arith.mulf %92, %99 : vector<2x16xf32>
    %101 = arith.mulf %100, %58 : vector<2x16xf32>
    %102 = vector.broadcast %69 : vector<2x1xf32> to vector<2x16xf32>
    %103 = arith.mulf %101, %102 : vector<2x16xf32>
    %cst_34 = arith.constant dense<0xFF800000> : vector<2xf32>
    %104 = vector.multi_reduction <maximumf>, %103, %cst_34 [1] : vector<2x16xf32> to vector<2xf32>
    %105 = vector.shape_cast %104 : vector<2xf32> to vector<2x1xf32>
    %106 = vector.broadcast %105 : vector<2x1xf32> to vector<2x16xf32>
    %107 = arith.subf %103, %106 : vector<2x16xf32>
    %108 = math.exp %107 : vector<2x16xf32>
    %cst_35 = arith.constant dense<0.000000e+00> : vector<2xf32>
    %109 = vector.multi_reduction <add>, %108, %cst_35 [1] : vector<2x16xf32> to vector<2xf32>
    %110 = vector.shape_cast %109 : vector<2xf32> to vector<2x1xf32>
    %111 = tpu.reciprocal %110 {approx = true} : vector<2x1xf32> -> vector<2x1xf32>
    %112 = arith.mulf %110, %111 : vector<2x1xf32>
    %cst_36 = arith.constant 2.000000e+00 : f32
    %113 = vector.broadcast %cst_36 : f32 to vector<2x1xf32>
    %114 = arith.subf %113, %112 : vector<2x1xf32>
    %115 = arith.mulf %111, %114 : vector<2x1xf32>
    %116 = vector.broadcast %115 : vector<2x1xf32> to vector<2x16xf32>
    %117 = arith.mulf %108, %116 : vector<2x16xf32>
    %118 = vector.broadcast %70 : vector<2x1xf32> to vector<2x16xf32>
    %119 = arith.mulf %117, %118 : vector<2x16xf32>
    %cst_37 = arith.constant 1.000000e+00 : f32
    %120 = vector.broadcast %cst_37 : f32 to vector<2x1xf32>
    %121 = arith.subf %120, %70 : vector<2x1xf32>
    %122 = vector.broadcast %121 : vector<2x1xf32> to vector<2x16xf32>
    %123 = arith.mulf %63, %122 : vector<2x16xf32>
    %124 = arith.addf %119, %123 : vector<2x16xf32>
    %cst_38 = arith.constant 0.000000e+00 : f32
    %125 = vector.broadcast %cst_38 : f32 to vector<2x16xf32>
    %126 = vector.extract_strided_slice %86 {offsets = [0, 0], sizes = [2, 1], strides = [1, 1]} : vector<2x3xf32> to vector<2x1xf32>
    %127 = vector.extract_strided_slice %124 {offsets = [0, 15], sizes = [2, 1], strides = [1, 1]} : vector<2x16xf32> to vector<2x1xf32>
    %128 = vector.extract_strided_slice %124 {offsets = [0, 0], sizes = [2, 15], strides = [1, 1]} : vector<2x16xf32> to vector<2x15xf32>
    %129 = tpu.concatenate %127, %128 in 1 : vector<2x1xf32>, vector<2x15xf32> -> vector<2x16xf32>
    %130 = vector.broadcast %126 : vector<2x1xf32> to vector<2x16xf32>
    %131 = arith.mulf %130, %129 : vector<2x16xf32>
    %132 = arith.addf %125, %131 : vector<2x16xf32>
    %133 = vector.extract_strided_slice %86 {offsets = [0, 1], sizes = [2, 1], strides = [1, 1]} : vector<2x3xf32> to vector<2x1xf32>
    %134 = vector.broadcast %133 : vector<2x1xf32> to vector<2x16xf32>
    %135 = arith.mulf %134, %124 : vector<2x16xf32>
    %136 = arith.addf %132, %135 : vector<2x16xf32>
    %137 = vector.extract_strided_slice %86 {offsets = [0, 2], sizes = [2, 1], strides = [1, 1]} : vector<2x3xf32> to vector<2x1xf32>
    %138 = vector.extract_strided_slice %124 {offsets = [0, 1], sizes = [2, 15], strides = [1, 1]} : vector<2x16xf32> to vector<2x15xf32>
    %139 = vector.extract_strided_slice %124 {offsets = [0, 0], sizes = [2, 1], strides = [1, 1]} : vector<2x16xf32> to vector<2x1xf32>
    %140 = tpu.concatenate %138, %139 in 1 : vector<2x15xf32>, vector<2x1xf32> -> vector<2x16xf32>
    %141 = vector.broadcast %137 : vector<2x1xf32> to vector<2x16xf32>
    %142 = arith.mulf %141, %140 : vector<2x16xf32>
    %143 = arith.addf %136, %142 : vector<2x16xf32>
    %cst_39 = arith.constant 1.000000e-30 : f32
    %144 = vector.broadcast %cst_39 : f32 to vector<2x16xf32>
    %145 = arith.maximumf %143, %144 : vector<2x16xf32>
    %146 = math.log %145 : vector<2x16xf32>
    %147 = vector.broadcast %71 : vector<2x1xf32> to vector<2x16xf32>
    %148 = arith.mulf %147, %146 : vector<2x16xf32>
    %149 = math.exp %148 : vector<2x16xf32>
    %cst_40 = arith.constant dense<0.000000e+00> : vector<2xf32>
    %150 = vector.multi_reduction <add>, %149, %cst_40 [1] : vector<2x16xf32> to vector<2xf32>
    %151 = vector.shape_cast %150 : vector<2xf32> to vector<2x1xf32>
    %152 = tpu.reciprocal %151 {approx = true} : vector<2x1xf32> -> vector<2x1xf32>
    %153 = arith.mulf %151, %152 : vector<2x1xf32>
    %cst_41 = arith.constant 2.000000e+00 : f32
    %154 = vector.broadcast %cst_41 : f32 to vector<2x1xf32>
    %155 = arith.subf %154, %153 : vector<2x1xf32>
    %156 = arith.mulf %152, %155 : vector<2x1xf32>
    %157 = vector.broadcast %156 : vector<2x1xf32> to vector<2x16xf32>
    %158 = arith.mulf %149, %157 : vector<2x16xf32>
    %cst_42 = arith.constant dense<0.000000e+00> : vector<2x128xf32>
    %159 = tpu.matmul %158, %52, %cst_42 {dimension_numbers = #tpu.dot_dimension_numbers<[1], [0], [0], [1], [0, 0, 1, 1], [], []>} : vector<2x16xf32>, vector<16x128xf32>, vector<2x128xf32> -> vector<2x128xf32>
    %160 = tpu.concatenate %67, %67 in 1 : vector<2x8xf32>, vector<2x8xf32> -> vector<2x16xf32>
    %161 = tpu.concatenate %160, %160 in 1 : vector<2x16xf32>, vector<2x16xf32> -> vector<2x32xf32>
    %162 = tpu.concatenate %161, %161 in 1 : vector<2x32xf32>, vector<2x32xf32> -> vector<2x64xf32>
    %163 = tpu.concatenate %162, %162 in 1 : vector<2x64xf32>, vector<2x64xf32> -> vector<2x128xf32>
    %164 = arith.mulf %159, %163 : vector<2x128xf32>
    %cst_43 = arith.constant 1.000000e+00 : f32
    %165 = vector.broadcast %cst_43 : f32 to vector<2x128xf32>
    %166 = arith.subf %165, %164 : vector<2x128xf32>
    %167 = arith.mulf %64, %166 : vector<2x128xf32>
    %168 = tpu.concatenate %68, %68 in 1 : vector<2x8xf32>, vector<2x8xf32> -> vector<2x16xf32>
    %169 = tpu.concatenate %168, %168 in 1 : vector<2x16xf32>, vector<2x16xf32> -> vector<2x32xf32>
    %170 = tpu.concatenate %169, %169 in 1 : vector<2x32xf32>, vector<2x32xf32> -> vector<2x64xf32>
    %171 = tpu.concatenate %170, %170 in 1 : vector<2x64xf32>, vector<2x64xf32> -> vector<2x128xf32>
    %172 = arith.mulf %159, %171 : vector<2x128xf32>
    %173 = arith.addf %65, %172 : vector<2x128xf32>
    %174 = vector.extract_strided_slice %8 {offsets = [0, 8], sizes = [2, 8], strides = [1, 1]} : vector<2x16xf32> to vector<2x8xf32>
    %175 = vector.extract_strided_slice %49 {offsets = [0, 8], sizes = [2, 8], strides = [1, 1]} : vector<2x16xf32> to vector<2x8xf32>
    %176 = vector.extract_strided_slice %51 {offsets = [0, 8], sizes = [2, 8], strides = [1, 1]} : vector<2x16xf32> to vector<2x8xf32>
    %177 = vector.extract_strided_slice %19 {offsets = [0, 1], sizes = [2, 1], strides = [1, 1]} : vector<2x2xf32> to vector<2x1xf32>
    %178 = vector.extract_strided_slice %27 {offsets = [0, 1], sizes = [2, 1], strides = [1, 1]} : vector<2x2xf32> to vector<2x1xf32>
    %179 = vector.extract_strided_slice %41 {offsets = [0, 1], sizes = [2, 1], strides = [1, 1]} : vector<2x2xf32> to vector<2x1xf32>
    %180 = vector.extract_strided_slice %28 {offsets = [0, 3], sizes = [2, 3], strides = [1, 1]} : vector<2x6xf32> to vector<2x3xf32>
    %cst_44 = arith.constant dense<0xFF800000> : vector<2xf32>
    %181 = vector.multi_reduction <maximumf>, %180, %cst_44 [1] : vector<2x3xf32> to vector<2xf32>
    %182 = vector.shape_cast %181 : vector<2xf32> to vector<2x1xf32>
    %183 = vector.broadcast %182 : vector<2x1xf32> to vector<2x3xf32>
    %184 = arith.subf %180, %183 : vector<2x3xf32>
    %185 = math.exp %184 : vector<2x3xf32>
    %cst_45 = arith.constant dense<0.000000e+00> : vector<2xf32>
    %186 = vector.multi_reduction <add>, %185, %cst_45 [1] : vector<2x3xf32> to vector<2xf32>
    %187 = vector.shape_cast %186 : vector<2xf32> to vector<2x1xf32>
    %188 = tpu.reciprocal %187 {approx = true} : vector<2x1xf32> -> vector<2x1xf32>
    %189 = arith.mulf %187, %188 : vector<2x1xf32>
    %cst_46 = arith.constant 2.000000e+00 : f32
    %190 = vector.broadcast %cst_46 : f32 to vector<2x1xf32>
    %191 = arith.subf %190, %189 : vector<2x1xf32>
    %192 = arith.mulf %188, %191 : vector<2x1xf32>
    %193 = vector.broadcast %192 : vector<2x1xf32> to vector<2x3xf32>
    %194 = arith.mulf %185, %193 : vector<2x3xf32>
    %195 = tpu.concatenate %174, %174 in 1 : vector<2x8xf32>, vector<2x8xf32> -> vector<2x16xf32>
    %196 = tpu.concatenate %195, %195 in 1 : vector<2x16xf32>, vector<2x16xf32> -> vector<2x32xf32>
    %197 = tpu.concatenate %196, %196 in 1 : vector<2x32xf32>, vector<2x32xf32> -> vector<2x64xf32>
    %198 = tpu.concatenate %197, %197 in 1 : vector<2x64xf32>, vector<2x64xf32> -> vector<2x128xf32>
    %199 = arith.mulf %198, %1 : vector<2x128xf32>
    %cst_47 = arith.constant dense<0.000000e+00> : vector<2x16xf32>
    %200 = tpu.matmul %199, %53, %cst_47 {dimension_numbers = #tpu.dot_dimension_numbers<[1], [0], [0], [1], [0, 0, 1, 1], [], []>} : vector<2x128xf32>, vector<128x16xf32>, vector<2x16xf32> -> vector<2x16xf32>
    %201 = arith.mulf %174, %174 : vector<2x8xf32>
    %cst_48 = arith.constant dense<0.000000e+00> : vector<2xf32>
    %202 = vector.multi_reduction <add>, %201, %cst_48 [1] : vector<2x8xf32> to vector<2xf32>
    %203 = vector.shape_cast %202 : vector<2xf32> to vector<2x1xf32>
    %cst_49 = arith.constant 9.99999997E-7 : f32
    %204 = vector.broadcast %cst_49 : f32 to vector<2x1xf32>
    %205 = arith.addf %203, %204 : vector<2x1xf32>
    %206 = math.rsqrt %205 : vector<2x1xf32>
    %207 = vector.broadcast %206 : vector<2x1xf32> to vector<2x16xf32>
    %208 = arith.mulf %200, %207 : vector<2x16xf32>
    %209 = arith.mulf %208, %58 : vector<2x16xf32>
    %210 = vector.broadcast %177 : vector<2x1xf32> to vector<2x16xf32>
    %211 = arith.mulf %209, %210 : vector<2x16xf32>
    %cst_50 = arith.constant dense<0xFF800000> : vector<2xf32>
    %212 = vector.multi_reduction <maximumf>, %211, %cst_50 [1] : vector<2x16xf32> to vector<2xf32>
    %213 = vector.shape_cast %212 : vector<2xf32> to vector<2x1xf32>
    %214 = vector.broadcast %213 : vector<2x1xf32> to vector<2x16xf32>
    %215 = arith.subf %211, %214 : vector<2x16xf32>
    %216 = math.exp %215 : vector<2x16xf32>
    %cst_51 = arith.constant dense<0.000000e+00> : vector<2xf32>
    %217 = vector.multi_reduction <add>, %216, %cst_51 [1] : vector<2x16xf32> to vector<2xf32>
    %218 = vector.shape_cast %217 : vector<2xf32> to vector<2x1xf32>
    %219 = tpu.reciprocal %218 {approx = true} : vector<2x1xf32> -> vector<2x1xf32>
    %220 = arith.mulf %218, %219 : vector<2x1xf32>
    %cst_52 = arith.constant 2.000000e+00 : f32
    %221 = vector.broadcast %cst_52 : f32 to vector<2x1xf32>
    %222 = arith.subf %221, %220 : vector<2x1xf32>
    %223 = arith.mulf %219, %222 : vector<2x1xf32>
    %224 = vector.broadcast %223 : vector<2x1xf32> to vector<2x16xf32>
    %225 = arith.mulf %216, %224 : vector<2x16xf32>
    %226 = vector.broadcast %178 : vector<2x1xf32> to vector<2x16xf32>
    %227 = arith.mulf %225, %226 : vector<2x16xf32>
    %cst_53 = arith.constant 1.000000e+00 : f32
    %228 = vector.broadcast %cst_53 : f32 to vector<2x1xf32>
    %229 = arith.subf %228, %178 : vector<2x1xf32>
    %230 = vector.broadcast %229 : vector<2x1xf32> to vector<2x16xf32>
    %231 = arith.mulf %63, %230 : vector<2x16xf32>
    %232 = arith.addf %227, %231 : vector<2x16xf32>
    %cst_54 = arith.constant 0.000000e+00 : f32
    %233 = vector.broadcast %cst_54 : f32 to vector<2x16xf32>
    %234 = vector.extract_strided_slice %194 {offsets = [0, 0], sizes = [2, 1], strides = [1, 1]} : vector<2x3xf32> to vector<2x1xf32>
    %235 = vector.extract_strided_slice %232 {offsets = [0, 15], sizes = [2, 1], strides = [1, 1]} : vector<2x16xf32> to vector<2x1xf32>
    %236 = vector.extract_strided_slice %232 {offsets = [0, 0], sizes = [2, 15], strides = [1, 1]} : vector<2x16xf32> to vector<2x15xf32>
    %237 = tpu.concatenate %235, %236 in 1 : vector<2x1xf32>, vector<2x15xf32> -> vector<2x16xf32>
    %238 = vector.broadcast %234 : vector<2x1xf32> to vector<2x16xf32>
    %239 = arith.mulf %238, %237 : vector<2x16xf32>
    %240 = arith.addf %233, %239 : vector<2x16xf32>
    %241 = vector.extract_strided_slice %194 {offsets = [0, 1], sizes = [2, 1], strides = [1, 1]} : vector<2x3xf32> to vector<2x1xf32>
    %242 = vector.broadcast %241 : vector<2x1xf32> to vector<2x16xf32>
    %243 = arith.mulf %242, %232 : vector<2x16xf32>
    %244 = arith.addf %240, %243 : vector<2x16xf32>
    %245 = vector.extract_strided_slice %194 {offsets = [0, 2], sizes = [2, 1], strides = [1, 1]} : vector<2x3xf32> to vector<2x1xf32>
    %246 = vector.extract_strided_slice %232 {offsets = [0, 1], sizes = [2, 15], strides = [1, 1]} : vector<2x16xf32> to vector<2x15xf32>
    %247 = vector.extract_strided_slice %232 {offsets = [0, 0], sizes = [2, 1], strides = [1, 1]} : vector<2x16xf32> to vector<2x1xf32>
    %248 = tpu.concatenate %246, %247 in 1 : vector<2x15xf32>, vector<2x1xf32> -> vector<2x16xf32>
    %249 = vector.broadcast %245 : vector<2x1xf32> to vector<2x16xf32>
    %250 = arith.mulf %249, %248 : vector<2x16xf32>
    %251 = arith.addf %244, %250 : vector<2x16xf32>
    %cst_55 = arith.constant 1.000000e-30 : f32
    %252 = vector.broadcast %cst_55 : f32 to vector<2x16xf32>
    %253 = arith.maximumf %251, %252 : vector<2x16xf32>
    %254 = math.log %253 : vector<2x16xf32>
    %255 = vector.broadcast %179 : vector<2x1xf32> to vector<2x16xf32>
    %256 = arith.mulf %255, %254 : vector<2x16xf32>
    %257 = math.exp %256 : vector<2x16xf32>
    %cst_56 = arith.constant dense<0.000000e+00> : vector<2xf32>
    %258 = vector.multi_reduction <add>, %257, %cst_56 [1] : vector<2x16xf32> to vector<2xf32>
    %259 = vector.shape_cast %258 : vector<2xf32> to vector<2x1xf32>
    %260 = tpu.reciprocal %259 {approx = true} : vector<2x1xf32> -> vector<2x1xf32>
    %261 = arith.mulf %259, %260 : vector<2x1xf32>
    %cst_57 = arith.constant 2.000000e+00 : f32
    %262 = vector.broadcast %cst_57 : f32 to vector<2x1xf32>
    %263 = arith.subf %262, %261 : vector<2x1xf32>
    %264 = arith.mulf %260, %263 : vector<2x1xf32>
    %265 = vector.broadcast %264 : vector<2x1xf32> to vector<2x16xf32>
    %266 = arith.mulf %257, %265 : vector<2x16xf32>
    %cst_58 = arith.constant dense<0.000000e+00> : vector<2x128xf32>
    %267 = tpu.matmul %266, %52, %cst_58 {dimension_numbers = #tpu.dot_dimension_numbers<[1], [0], [0], [1], [0, 0, 1, 1], [], []>} : vector<2x16xf32>, vector<16x128xf32>, vector<2x128xf32> -> vector<2x128xf32>
    %268 = tpu.concatenate %175, %175 in 1 : vector<2x8xf32>, vector<2x8xf32> -> vector<2x16xf32>
    %269 = tpu.concatenate %268, %268 in 1 : vector<2x16xf32>, vector<2x16xf32> -> vector<2x32xf32>
    %270 = tpu.concatenate %269, %269 in 1 : vector<2x32xf32>, vector<2x32xf32> -> vector<2x64xf32>
    %271 = tpu.concatenate %270, %270 in 1 : vector<2x64xf32>, vector<2x64xf32> -> vector<2x128xf32>
    %272 = arith.mulf %267, %271 : vector<2x128xf32>
    %cst_59 = arith.constant 1.000000e+00 : f32
    %273 = vector.broadcast %cst_59 : f32 to vector<2x128xf32>
    %274 = arith.subf %273, %272 : vector<2x128xf32>
    %275 = arith.mulf %167, %274 : vector<2x128xf32>
    %276 = tpu.concatenate %176, %176 in 1 : vector<2x8xf32>, vector<2x8xf32> -> vector<2x16xf32>
    %277 = tpu.concatenate %276, %276 in 1 : vector<2x16xf32>, vector<2x16xf32> -> vector<2x32xf32>
    %278 = tpu.concatenate %277, %277 in 1 : vector<2x32xf32>, vector<2x32xf32> -> vector<2x64xf32>
    %279 = tpu.concatenate %278, %278 in 1 : vector<2x64xf32>, vector<2x64xf32> -> vector<2x128xf32>
    %280 = arith.mulf %267, %279 : vector<2x128xf32>
    %281 = arith.addf %173, %280 : vector<2x128xf32>
    %282 = tpu.concatenate %158, %266 in 1 : vector<2x16xf32>, vector<2x16xf32> -> vector<2x32xf32>
    %c0_60 = arith.constant 0 : index
    %c0_61 = arith.constant 0 : index
    %283 = vector.load %arg7[%c0_60, %c0_61] : memref<2x32xf32, #tpu.memory_space<vmem>>, vector<2x32xf32>
    tpu.vector_store %arg7[%c0_60, %c0_61], %282 {strides = array<i32>} : memref<2x32xf32, #tpu.memory_space<vmem>>, vector<2x32xf32>,
    %284 = arith.mulf %1, %275 : vector<2x128xf32>
    %285 = arith.addf %284, %281 : vector<2x128xf32>
    %c0_62 = arith.constant 0 : index
    %c0_63 = arith.constant 0 : index
    %286 = vector.load %arg8[%c0_62, %c0_63] : memref<2x128xf32, #tpu.memory_space<vmem>>, vector<2x128xf32>
    tpu.vector_store %arg8[%c0_62, %c0_63], %285 {strides = array<i32>} : memref<2x128xf32, #tpu.memory_space<vmem>>, vector<2x128xf32>,
    return
  }
  func.func @transform_0(%arg0: i32) -> (i32, i32) {
    %c0_i32 = arith.constant 0 : i32
    %c0_i32_0 = arith.constant 0 : i32
    return %arg0, %c0_i32 : i32, i32
  }
  func.func @transform_1(%arg0: i32) -> (i32, i32) {
    %c0_i32 = arith.constant 0 : i32
    %c0_i32_0 = arith.constant 0 : i32
    return %arg0, %c0_i32 : i32, i32
  }
  func.func @transform_2(%arg0: i32) -> (i32, i32) {
    %c0_i32 = arith.constant 0 : i32
    %c0_i32_0 = arith.constant 0 : i32
    %c0_i32_1 = arith.constant 0 : i32
    return %c0_i32, %c0_i32_0 : i32, i32
  }
  func.func @transform_3(%arg0: i32) -> (i32, i32) {
    %c0_i32 = arith.constant 0 : i32
    %c0_i32_0 = arith.constant 0 : i32
    %c0_i32_1 = arith.constant 0 : i32
    return %c0_i32, %c0_i32_0 : i32, i32
  }
  func.func @transform_4(%arg0: i32) -> (i32, i32) {
    %c0_i32 = arith.constant 0 : i32
    %c0_i32_0 = arith.constant 0 : i32
    %c0_i32_1 = arith.constant 0 : i32
    return %c0_i32, %c0_i32_0 : i32, i32
  }
  func.func @transform_5(%arg0: i32) -> (i32, i32) {
    %c0_i32 = arith.constant 0 : i32
    %c0_i32_0 = arith.constant 0 : i32
    %c0_i32_1 = arith.constant 0 : i32
    return %c0_i32, %c0_i32_0 : i32, i32
  }
  func.func @transform_6(%arg0: i32) -> (i32, i32) {
    %c0_i32 = arith.constant 0 : i32
    %c0_i32_0 = arith.constant 0 : i32
    return %arg0, %c0_i32 : i32, i32
  }
  func.func @transform_7(%arg0: i32) -> (i32, i32) {
    %c0_i32 = arith.constant 0 : i32
    %c0_i32_0 = arith.constant 0 : i32
    return %arg0, %c0_i32 : i32, i32
  }
}

</mosaic_0001>

<bundles_post_ra>
// kernel: tpu_custom_call.1
= control target key start
LH: loop header
LB: loop body
LE: loop exit
PB: predicated region body
PF: predicated region fallthrough
CT: control target
= control target key end

     0   :  { %13 = vsyncpa [#allocation3], 0  ;;  %v1334_v3 = vmov 0.0|0.0   ;;  %vm1335_vm0 = vmmov 0   ;;  %v1336_v6 = vmov 0.0   ;;  %s1666_s0 = inlined_call_operand.vmem [shape: f32[2,32], index: 0, kind: input, shape index: {}]   ;;  %s1667_s1 = inlined_call_operand.vmem [shape: f32[2,128], index: 1, kind: input, shape index: {}]   ;;  %s1668_s2 = inlined_call_operand.vmem [shape: f32[32,60], index: 2, kind: input, shape index: {}]   ;;  %s1669_s3 = inlined_call_operand.vmem [shape: f32[1,60], index: 3, kind: input, shape index: {}]   ;;  %s1670_s4 = inlined_call_operand.vmem [shape: f32[16,128], index: 4, kind: input, shape index: {}]   ;;  %s1671_s5 = inlined_call_operand.vmem [shape: f32[128,16], index: 5, kind: input, shape index: {}]   ;;  %s1672_s6 = inlined_call_operand.hbm [shape: f32[2,32], index: 6, kind: output, shape index: {0}]   ;;  %s1673_s7 = inlined_call_operand.hbm [shape: f32[2,128], index: 7, kind: output, shape index: {1}]  }
   0x1   :  { %v29_v0 = vld [vmem:[%s1668_s2] sm:$0xff]  ;;  %v30_v1 = vld [vmem:[%s1668_s2 + $0x8] sm:$0xff]  ;;  %v31_v2 = vld [vmem:[%s1668_s2 + $0x10] sm:$0xff]  ;;  %1112 = vmatprep.subr.bf16.mxu0 %v1334_v3  ;;  %990 = vmatprep.mubr.msk.f32.mxu0 %vm1335_vm0, %v1336_v6 }
   0x2   :  { %v1113_v4 = vpack.c.bf16 %v30_v1, %v29_v0  ;;  %v32_v5 = vld [vmem:[%s1668_s2 + $0x18] sm:$0xff]  ;;  %1118 = vmatprep.subr.bf16.mxu1 %v1334_v3  ;;  %1025 = vmatprep.mubr.msk.f32.mxu1 %vm1335_vm0, %v1336_v6 }
   0x3   :  { %14 = vsyncpa [#allocation5], 0  ;;  %v1116_v7 = vpack.c.bf16 %v32_v5, %v31_v2  ;;  %v27_v8 = vld [vmem:[%s1666_s0] sm:$0x3]  ;;  %vm40_vm1 = vcmask 261120   ;;  %s1337_s0 = smov 8  }
   0x4   :  { %1114 = vmatpush3.bf16.msra.mxu0 %v1113_v4  ;;  %v915_v9 = vld [vmem:[%s1669_s3] ss:$0 sm:$0xff]  ;;  %s1338_s12 = smov 120   ;;  %vm250_vm2 = vcmask 64512   ;;  %s1339_s3 = smov 16   ;;  %vm256_vm3 = vcmask 130048  }
   0x5   :  { %1115 = vmatprep.subr.bf16.mxu0 %v1334_v3  ;;  %s1340_s13 = smov 32   ;;  %v1341_v22 = vmov 17   ;;  %v133_v23 = vld [vmem:[%s1671_s5] sm:$0xff]  ;;  %v134_v24 = vld [vmem:[%s1671_s5 + $0x8] sm:$0xff]  ;;  %v135_v26 = vld [vmem:[%s1671_s5 + $0x10] sm:$0xff]  ;;  %v1342_v49 = vmov 16  }
   0x6   :  { %1229 = vset.pattern.permute.xlu1 %v1341_v22  ;;  %v1119_v25 = vpack.c.bf16 %v134_v24, %v133_v23  ;;  %v136_v27 = vld [vmem:[%s1671_s5 + $0x18] sm:$0xff]  ;;  %v137_v29 = vld [vmem:[%s1671_s5 + $0x20] sm:$0xff]  ;;  %v138_v30 = vld [vmem:[%s1671_s5 + $0x28] sm:$0xff]  ;;  %1228 = vset.pattern.permute.xlu0 %v1342_v49  ;;  %vm341_vm4 = vcmask 58368   ;;  %vm226_vm5 = vcmask 181408   ;;  %vm267_vm6 = vcmask 523264  }
   0x7   :  { %v1122_v28 = vpack.c.bf16 %v136_v27, %v135_v26  ;;  %v1125_v31 = vpack.c.bf16 %v138_v30, %v137_v29  ;;  %v139_v32 = vld [vmem:[%s1671_s5 + $0x30] sm:$0xff]  ;;  %v140_v33 = vld [vmem:[%s1671_s5 + $0x38] sm:$0xff]  ;;  %v141_v35 = vld [vmem:[%s1671_s5 + $0x40] sm:$0xff]  ;;  %vm560_vm7 = vcmask 206008   ;;  %vm355_vm8 = vcmask 123904   ;;  %s1352_s25 = smov 1  }
   0x8   :  { %1117 = vmatpush3.bf16.msra.mxu0 %v1116_v7  ;;  %1120 = vmatpush3.bf16.msra.mxu1 %v1119_v25  ;;  %v1128_v34 = vpack.c.bf16 %v140_v33, %v139_v32  ;;  %v142_v36 = vld [vmem:[%s1671_s5 + $0x48] sm:$0xff]  ;;  %v143_v38 = vld [vmem:[%s1671_s5 + $0x50] sm:$0xff]  ;;  %v144_v39 = vld [vmem:[%s1671_s5 + $0x58] sm:$0xff]  ;;  %vm237_vm9 = vcmask 17408   ;;  %s1354_s26 = smov 127   ;;  %s1357_s27 = smov 113  }
   0x9   :  { %1142 = vmatprep.subr.bf16.mxu0 %v1334_v3  ;;  %1121 = vmatprep.subr.bf16.mxu1 %v1334_v3  ;;  %v1131_v37 = vpack.c.bf16 %v142_v36, %v141_v35  ;;  %v1134_v40 = vpack.c.bf16 %v144_v39, %v143_v38  ;;  %v145_v41 = vld [vmem:[%s1671_s5 + $0x60] sm:$0xff]  ;;  %v146_v42 = vld [vmem:[%s1671_s5 + $0x68] sm:$0xff]  ;;  %v147_v44 = vld [vmem:[%s1671_s5 + $0x70] sm:$0xff]  ;;  %s1359_s28 = smov 15   ;;  %vm391_vm11 = vcmask 7168   ;;  %vm412_vm12 = vcmask 121856  }
   0xa   :  { %v1137_v43 = vpack.c.bf16 %v146_v42, %v145_v41  ;;  %v148_v45 = vld [vmem:[%s1671_s5 + $0x78] sm:$0xff]  ;;  %v1522_v47 = vld [vmem:[%s1667_s1] sm:$0x3]  ;;  %s1343_s1 = smov 64   ;;  %s1344_s5 = smov 105   ;;  %vm882_vm13 = vcmask 254976  }
   0xb   :  { %991 = vmatmul.mubr.msk.f32.vlgmr.msra.gmra.mrb[0].mxu0 %vm40_vm1, %v27_v8  ;;  %v1140_v46 = vpack.c.bf16 %v148_v45, %v147_v44  ;;  %v149_v48 = vmul.f32 %v1522_v47, %v1522_v47  ;;  %s1360_s29 = smov 92   ;;  %s1361_s30 = smov 100  }
   0xc   :  { %1060 = vmatprep.mubr.msk.f32.mxu0 %vm1335_vm0, %v1336_v6  ;;  %1144 = vmatpush3.bf16.msra.mxu0 %v1119_v25  ;;  %s1362_s11 = smov 84  }
   0xd   :  { %1145 = vmatprep.subr.bf16.mxu0 %v1334_v3  ;;  %1123 = vmatpush3.bf16.msra.mxu1 %v1122_v28 }
   0xe   :  { %1124 = vmatprep.subr.bf16.mxu1 %v1334_v3 }
  0x10   :  { %1147 = vmatpush3.bf16.msra.mxu0 %v1122_v28 }
  0x11   :  { %1148 = vmatprep.subr.bf16.mxu0 %v1334_v3  ;;  %1126 = vmatpush3.bf16.msra.mxu1 %v1125_v31 }
  0x12   :  { %1127 = vmatprep.subr.bf16.mxu1 %v1334_v3 }
  0x14   :  { %1150 = vmatpush3.bf16.msra.mxu0 %v1125_v31 }
  0x15   :  { %1151 = vmatprep.subr.bf16.mxu0 %v1334_v3  ;;  %1129 = vmatpush3.bf16.msra.mxu1 %v1128_v34 }
  0x16   :  { %1130 = vmatprep.subr.bf16.mxu1 %v1334_v3 }
  0x18   :  { %1153 = vmatpush3.bf16.msra.mxu0 %v1128_v34 }
  0x19   :  { %1154 = vmatprep.subr.bf16.mxu0 %v1334_v3  ;;  %1132 = vmatpush3.bf16.msra.mxu1 %v1131_v37 }
  0x1a   :  { %1133 = vmatprep.subr.bf16.mxu1 %v1334_v3 }
  0x1c   :  { %1156 = vmatpush3.bf16.msra.mxu0 %v1131_v37 }
  0x1d   :  { %1157 = vmatprep.subr.bf16.mxu0 %v1334_v3  ;;  %1135 = vmatpush3.bf16.msra.mxu1 %v1134_v40 }
  0x1e   :  { %1136 = vmatprep.subr.bf16.mxu1 %v1334_v3 }
  0x20   :  { %1159 = vmatpush3.bf16.msra.mxu0 %v1134_v40 }
  0x21   :  { %1160 = vmatprep.subr.bf16.mxu0 %v1334_v3  ;;  %1138 = vmatpush3.bf16.msra.mxu1 %v1137_v43 }
  0x22   :  { %1139 = vmatprep.subr.bf16.mxu1 %v1334_v3 }
  0x24   :  { %1162 = vmatpush3.bf16.msra.mxu0 %v1137_v43 }
  0x25   :  { %1163 = vmatprep.subr.bf16.mxu0 %v1334_v3  ;;  %1141 = vmatpush3.bf16.msra.mxu1 %v1140_v46 }
  0x26   :  { %1169 = vmatprep.subr.bf16.mxu1 %v1334_v3 }
  0x28   :  { %1165 = vmatpush3.bf16.msra.mxu0 %v1140_v46  ;;  %1026 = vmatmul.mubr.f32.vlgmr.msra.gmra.mrb[0].mxu1 %v149_v48  ;;  %v1346_v48 = vmov 18  }
  0x29   :  { %1166 = vmatprep.subr.bf16.mxu0 %v1334_v3  ;;  %1171 = vmatpush3.bf16.msra.mxu1 %v1119_v25 }
  0x2a   :  { %1102 = vmatprep.mubr.msk.f32.mxu1 %vm1335_vm0, %v1336_v6  ;;  %1172 = vmatprep.subr.bf16.mxu1 %v1334_v3 }
  0x2d   :  { %1174 = vmatpush3.bf16.msra.mxu1 %v1122_v28 }
  0x2e   :  { %1175 = vmatprep.subr.bf16.mxu1 %v1334_v3 }
  0x31   :  { %1177 = vmatpush3.bf16.msra.mxu1 %v1125_v31 }
  0x32   :  { %1178 = vmatprep.subr.bf16.mxu1 %v1334_v3 }
  0x35   :  { %1180 = vmatpush3.bf16.msra.mxu1 %v1128_v34 }
  0x36   :  { %1181 = vmatprep.subr.bf16.mxu1 %v1334_v3 }
  0x39   :  { %1183 = vmatpush3.bf16.msra.mxu1 %v1131_v37 }
  0x3a   :  { %1184 = vmatprep.subr.bf16.mxu1 %v1334_v3 }
  0x3d   :  { %1186 = vmatpush3.bf16.msra.mxu1 %v1134_v40 }
  0x3e   :  { %1187 = vmatprep.subr.bf16.mxu1 %v1334_v3 }
  0x41   :  { %1189 = vmatpush3.bf16.msra.mxu1 %v1137_v43 }
  0x42   :  { %1190 = vmatprep.subr.bf16.mxu1 %v1334_v3 }
  0x45   :  { %1192 = vmatpush3.bf16.msra.mxu1 %v1140_v46 }
  0xde   :  { %v110_v10 = vpop.f32.mrb[0].mxu0 }
  0xdf   :  { %v1435_v11 = vadd.f32 %v915_v9, %v110_v10  ;;  %v992_v12 = vpop.f32.mrb[1].mxu0 }
  0xe1   :  { %1242 = vtanh.f32 %v1435_v11  ;;  %v115_v55 = vand.u32 2147483647, %v1435_v11  ;;  %v122_v63 = vmax.f32 %v1435_v11, 0.0  ;;  %v227_v1 = vsel %vm226_vm5, %v1435_v11, -inf }
  0xe2   :  { %v124_v49 = vsub.f32 0.0, %v1435_v11 }
  0xe3   :  { %v116_v56 = vsub.f32 0.0, %v115_v55 }
  0xe5   :  { %v117_v57 = vmul.f32 1.442695, %v116_v56 }
  0xe7   :  { %1244 = vpow2.f32 %v117_v57 }
  0xeb   :  { %v1438_v13 = vpop.eup %1242 }
  0xec   :  { %247 = vrot.lane.b32.xlu0 %v1438_v13, %s1337_s0  ;;  %v340_v53 = vmul.f32 %v1438_v13, %v1438_v13  ;;  %s1363_s0 = smov 76  }
  0xee   :  { %v342_v60 = vsel %vm341_vm4, %v340_v53, 0.0 }
  0xf0   :  { %579 = vrot.lane.b32.xlu0 %v1438_v13, %s1338_s12 }
  0xf1   :  { %v1245_v58 = vpop.eup %1244 }
  0xf2   :  { %v119_v59 = vadd.f32 1.0, %v1245_v58 }
  0xf4   :  { %1246 = vlog2.f32 %v119_v59 }
  0xfe   :  { %v1247_v61 = vpop.eup %1246 }
  0xff   :  { %v121_v62 = vmul.f32 0.6931472, %v1247_v61 }
 0x101   :  { %v1551_v0 = vadd.f32 %v122_v63, %v121_v62  ;;  %v1347_v63 = vmov 19  }
 0x15e   :  { %v248_v14 = vpop.permute.xlu0 %247 }
 0x15f   :  { %v251_v15 = vsel %vm250_vm2, %v1438_v13, %v248_v14  ;;  %v561_v14 = vsel %vm560_vm7, %v1435_v11, -inf }
 0x160   :  { %253 = vrot.lane.b32.xlu1 %v251_v15, %s1339_s3 }
 0x162   :  { %v580_v16 = vpop.permute.xlu0 %579 }
 0x163   :  { %v582_v17 = vsel %vm250_vm2, %v580_v16, %v1438_v13 }
 0x164   :  { %584 = vrot.lane.b32.xlu1 %v582_v17, %s1339_s3 }
 0x1d2   :  { %v254_v18 = vpop.permute.xlu1 %253 }
 0x1d3   :  { %v1450_v19 = vsel %vm256_vm3, %v251_v15, %v254_v18  ;;  %v216_v15 = vpop.f32.mrb[0].mxu1 }
 0x1d4   :  { %259 = vrot.lane.b32.xlu0 %v1450_v19, %s1340_s13  ;;  %v1027_v16 = vpop.f32.mrb[1].mxu1  ;;  %v217_v23 = vadd.f32 1e-06, %v216_v15 }
 0x1d6   :  { %v585_v20 = vpop.permute.xlu1 %584 }
 0x1d7   :  { %v1455_v21 = vsel %vm256_vm3, %v582_v17, %v585_v20 }
 0x1d8   :  { %589 = vrot.lane.b32.xlu1 %v1455_v21, %s1340_s13 }
 0x246   :  { %v260_v50 = vpop.permute.xlu0 %259 }
 0x247   :  { %v262_v51 = vsel %vm40_vm1, %v1450_v19, %v260_v50  ;;  %v125_v50 = vmul.f32 1.442695, %v124_v49 }
 0x248   :  { %264 = vrot.lane.b32.xlu0 %v262_v51, %s1343_s1 }
 0x24a   :  { %v590_v52 = vpop.permute.xlu1 %589 }
 0x24b   :  { %v592_v54 = vsel %vm40_vm1, %v1455_v21, %v590_v52 }
 0x24c   :  { %594 = vrot.lane.b32.xlu1 %v592_v54, %s1343_s1  ;;  %670 = vrot.lane.b32.xlu0 %v340_v53, %s1338_s12  ;;  %s1345_s12 = smov 108  }
 0x270   :  { %343 = vadd.xlane.f32.xlu1 %v342_v60 }
 0x281   :  { %681 = vperm.xlu1 %1229, %v1551_v0  }
 0x285   :  { %1230 = vset.pattern.permute.xlu1 %v1346_v48 }
 0x2a5   :  { %228 = vmax.xlane.f32.xlu1 %v227_v1 }
 0x2ba   :  { %v265_v2 = vpop.permute.xlu0 %264 }
 0x2bb   :  { %v268_v4 = vsel %vm267_vm6, %v262_v51, %v265_v2 }
 0x2bc   :  { %v269_v5 = vmul.f32 %v268_v4, %v1522_v47 }
 0x2be   :  { %v595_v7 = vpop.permute.xlu1 %594  ;;  %1061 = vmatmul.mubr.f32.vlgmr.msra.gmra.mrb[2].mxu0 %v269_v5  ;;  %v671_v8 = vpop.permute.xlu0 %670 }
 0x2bf   :  { %v597_v9 = vsel %vm267_vm6, %v592_v54, %v595_v7  ;;  %v673_v10 = vsel %vm341_vm4, %v671_v8, 0.0  ;;  %1067 = vmatprep.mubr.msk.f32.mxu0 %vm1335_vm0, %v1336_v6  ;;  %v1348_v8 = vmov 20  }
 0x2c0   :  { %v598_v12 = vmul.f32 %v597_v9, %v1522_v47  ;;  %674 = vadd.xlane.f32.xlu0 %v673_v10  ;;  %v1349_v9 = vmov 26  }
 0x2c2   :  { %1103 = vmatmul.mubr.f32.vlgmr.msra.gmra.mrb[2].mxu1 %v598_v12 }
 0x2d6   :  { %351 = vperm.xlu0 %1228, %v1551_v0  }
 0x2da   :  { %1231 = vset.pattern.permute.xlu0 %v1346_v48 }
 0x2f5   :  { %562 = vmax.xlane.f32.xlu0 %v561_v14 }
 0x2fd   :  { %v344_v19 = vpop.xlane.xlu1 %343 }
 0x2fe   :  { %v345_v20 = vadd.f32 1e-06, %v344_v19 }
 0x300   :  { %1248 = vrsqrt.f32 %v345_v20 }
 0x301   :  { %v682_v32 = vpop.permute.xlu1 %681 }
 0x30a   :  { %v1249_v26 = vpop.eup %1248 }
 0x332   :  { %v229_v39 = vpop.xlane.xlu1 %228 }
 0x333   :  { %v230_v43 = vsub.f32 %v1435_v11, %v229_v39  ;;  %v1351_v39 = vmov 22  }
 0x335   :  { %v231_v45 = vmul.f32 1.442695, %v230_v43  ;;  %v1356_v43 = vmov 25  }
 0x34d   :  { %v675_v17 = vpop.xlane.xlu0 %674 }
 0x34e   :  { %v676_v25 = vadd.f32 1e-06, %v675_v17  ;;  %v221_v17 = vlaneseq }
 0x355   :  { %v352_v18 = vpop.permute.xlu0 %351 }
 0x382   :  { %v563_v21 = vpop.xlane.xlu0 %562 }
 0x383   :  { %v564_v22 = vsub.f32 %v1435_v11, %v563_v21  ;;  %v222_v21 = vand.u32 127, %v221_v17 }
 0x385   :  { %v565_v24 = vmul.f32 1.442695, %v564_v22  ;;  %vm223_vm10 = vcmp.eq.s32.totalorder %v222_v21, 0 }
 0x387   :  { %1250 = vpow2.f32 %v565_v24 }
 0x388   :  { %1252 = vrsqrt.f32 %v217_v23 }
 0x389   :  { %1254 = vrsqrt.f32 %v676_v25 }
 0x38a   :  { %1256 = vpow2.f32 %v231_v45 }
 0x38b   :  { %1258 = vpow2.f32 %v125_v50 }
 0x391   :  { %v1565_v27 = vpop.eup %1250  ;;  %v336_v28 = vpop.f32.mrb[2].mxu0 }
 0x392   :  { %v347_v29 = vmul.f32 %v1249_v26, %v336_v28  ;;  %568 = vrot.lane.b32.xlu0 %v1565_v27, %s1344_s5  ;;  %v1062_v30 = vpop.f32.mrb[3].mxu0  ;;  %v1253_v31 = vpop.eup %1252 }
 0x393   :  { %v1255_v34 = vpop.eup %1254 }
 0x394   :  { %v348_v33 = vmul.f32 %v1253_v31, %v347_v29  ;;  %v1257_v46 = vpop.eup %1256  ;;  %v917_v29 = vsel %vm223_vm10, 1.0, %v1336_v6 }
 0x395   :  { %v665_v35 = vpop.f32.mrb[2].mxu1  ;;  %v1259_v58 = vpop.eup %1258 }
 0x396   :  { %v678_v36 = vmul.f32 %v1255_v34, %v665_v35  ;;  %v1104_v37 = vpop.f32.mrb[3].mxu1  ;;  %v354_v38 = vmul.f32 %v352_v18, %v348_v33  ;;  %v127_v61 = vadd.f32 1.0, %v1259_v58 }
 0x398   :  { %v679_v40 = vmul.f32 %v1253_v31, %v678_v36  ;;  %v356_v41 = vsel %vm355_vm8, %v354_v38, -inf  ;;  %v1350_v31 = vmov 21  }
 0x399   :  { %357 = vmax.xlane.f32.xlu1 %v356_v41  ;;  %v1353_v41 = vmov 23  }
 0x39a   :  { %v684_v42 = vmul.f32 %v682_v32, %v679_v40 }
 0x39c   :  { %v685_v44 = vsel %vm355_vm8, %v684_v42, -inf }
 0x39d   :  { %686 = vmax.xlane.f32.xlu1 %v685_v44  ;;  %v1358_v44 = vmov 27  }
 0x3ae   :  { %234 = vrot.lane.b32.xlu1 %v1257_v46, %s1345_s12 }
 0x404   :  { %v569_v57 = vpop.permute.xlu0 %568 }
 0x405   :  { %v571_v59 = vsel %vm237_vm9, %v569_v57, 0.0 }
 0x426   :  { %v358_v51 = vpop.xlane.xlu1 %357 }
 0x427   :  { %v359_v52 = vsub.f32 %v354_v38, %v358_v51 }
 0x429   :  { %v360_v53 = vmul.f32 1.442695, %v359_v52 }
 0x42a   :  { %v687_v54 = vpop.xlane.xlu1 %686 }
 0x42b   :  { %1260 = vpow2.f32 %v360_v53  ;;  %v688_v2 = vsub.f32 %v684_v42, %v687_v54  ;;  %v1355_v42 = vmov 24  }
 0x42c   :  { %1262 = vrcp.f32 %v127_v61 }
 0x42d   :  { %v689_v4 = vmul.f32 1.442695, %v688_v2 }
 0x42e   :  { %v235_v55 = vpop.permute.xlu1 %234 }
 0x42f   :  { %v238_v56 = vsel %vm237_vm9, %v235_v55, 0.0  ;;  %1264 = vpow2.f32 %v689_v4 }
 0x430   :  { %239 = vadd.xlane.f32.xlu1 %v238_v56  ;;  %v130_v56 = vadd.f32 1.0, %v1551_v0 }
 0x434   :  { %572 = vadd.xlane.f32.xlu1 %v571_v59 }
 0x435   :  { %v1261_v60 = vpop.eup %1260 }
 0x436   :  { %v362_v62 = vsel %vm355_vm8, %v1261_v60, 0.0  ;;  %v1574_v11 = vpop.eup %1262 }
 0x437   :  { %363 = vadd.xlane.f32.xlu0 %v362_v62  ;;  %v376_v1 = vsub.f32 1.0, %v1574_v11 }
 0x439   :  { %v1579_v5 = vpop.eup %1264 }
 0x43a   :  { %v691_v7 = vsel %vm355_vm8, %v1579_v5, 0.0 }
 0x445   :  { %372 = vperm.xlu1 %1230, %v1574_v11  }
 0x449   :  { %1232 = vset.pattern.permute.xlu1 %v1347_v63 }
 0x44a   :  { %700 = vperm.xlu1 %1232, %v1574_v11  }
 0x44d   :  { %379 = vperm.xlu0 %1231, %v376_v1  }
 0x451   :  { %1239 = vset.pattern.permute.xlu0 %v1349_v9 }
 0x46e   :  { %692 = vadd.xlane.f32.xlu1 %v691_v7 }
 0x47f   :  { %705 = vperm.xlu1 %1232, %v376_v1  }
 0x483   :  { %1233 = vset.pattern.permute.xlu1 %v1348_v8 }
 0x4bd   :  { %v240_v10 = vpop.xlane.xlu1 %239 }
 0x4be   :  { %1266 = vrcp.f32 %v240_v10 }
 0x4c1   :  { %v573_v12 = vpop.xlane.xlu1 %572 }
 0x4c2   :  { %1268 = vrcp.f32 %v573_v12 }
 0x4c4   :  { %v364_v14 = vpop.xlane.xlu0 %363 }
 0x4c5   :  { %1270 = vrcp.f32 %v364_v14  ;;  %v373_v34 = vpop.permute.xlu1 %372 }
 0x4c8   :  { %v1267_v15 = vpop.eup %1266 }
 0x4c9   :  { %v242_v16 = vmul.f32 %v1267_v15, %v240_v10  ;;  %v701_v45 = vpop.permute.xlu1 %700 }
 0x4cb   :  { %v243_v18 = vsub.f32 2.0, %v242_v16 }
 0x4cc   :  { %v1269_v20 = vpop.eup %1268  ;;  %v380_v30 = vpop.permute.xlu0 %379 }
 0x4cd   :  { %v244_v19 = vmul.f32 %v1267_v15, %v243_v18  ;;  %v575_v25 = vmul.f32 %v1269_v20, %v573_v12  ;;  %v382_v36 = vmul.f32 %v917_v29, %v380_v30 }
 0x4cf   :  { %v1271_v22 = vpop.eup %1270  ;;  %v245_v23 = vmul.f32 %v1257_v46, %v244_v19  ;;  %v576_v32 = vsub.f32 2.0, %v575_v25 }
 0x4d0   :  { %v366_v24 = vmul.f32 %v1271_v22, %v364_v14 }
 0x4d1   :  { %395 = vperm.xlu1 %1233, %v245_v23   ;;  %v577_v37 = vmul.f32 %v1269_v20, %v576_v32 }
 0x4d2   :  { %v367_v26 = vsub.f32 2.0, %v366_v24 }
 0x4d3   :  { %v578_v40 = vmul.f32 %v1565_v27, %v577_v37 }
 0x4d4   :  { %v368_v28 = vmul.f32 %v1271_v22, %v367_v26 }
 0x4d5   :  { %1234 = vset.pattern.permute.xlu1 %v1350_v31 }
 0x4d6   :  { %v369_v33 = vmul.f32 %v1261_v60, %v368_v28  ;;  %401 = vperm.xlu1 %1234, %v245_v23  }
 0x4d8   :  { %v375_v35 = vmul.f32 %v373_v34, %v369_v33 }
 0x4da   :  { %v383_v38 = vadd.f32 %v382_v36, %v375_v35  ;;  %1235 = vset.pattern.permute.xlu1 %v1351_v39 }
 0x4db   :  { %415 = vperm.xlu1 %1235, %v245_v23  }
 0x4dc   :  { %388 = vrot.lane.b32.xlu0 %v383_v38, %s1352_s25 }
 0x4df   :  { %1236 = vset.pattern.permute.xlu1 %v1353_v41 }
 0x4e0   :  { %720 = vperm.xlu1 %1236, %v578_v40   ;;  %406 = vrot.lane.b32.xlu0 %v383_v38, %s1354_s26 }
 0x4e4   :  { %1237 = vset.pattern.permute.xlu1 %v1355_v42  ;;  %v131_v42 = vld [vmem:[%s1670_s4] sm:$0xff] }
 0x4e5   :  { %726 = vperm.xlu1 %1237, %v578_v40  }
 0x4e9   :  { %1238 = vset.pattern.permute.xlu1 %v1356_v43  ;;  %v132_v43 = vld [vmem:[%s1670_s4 + $0x8] sm:$0xff]  ;;  %s1364_s4 = smov [#allocation2]  }
 0x4ea   :  { %739 = vperm.xlu1 %1238, %v578_v40  }
 0x4ee   :  { %385 = vrot.lane.b32.xlu1 %v383_v38, %s1357_s27 }
 0x4ef   :  { %1240 = vset.pattern.permute.xlu1 %v1358_v44 }
 0x4f2   :  { %409 = vrot.lane.b32.xlu1 %v383_v38, %s1359_s28 }
 0x4fb   :  { %v693_v46 = vpop.xlane.xlu1 %692 }
 0x4fc   :  { %1272 = vrcp.f32 %v693_v46 }
 0x4ff   :  { %v706_v51 = vpop.permute.xlu1 %705 }
 0x500   :  { %v708_v54 = vmul.f32 %v917_v29, %v706_v51 }
 0x506   :  { %v1273_v27 = vpop.eup %1272 }
 0x507   :  { %v695_v48 = vmul.f32 %v1273_v27, %v693_v46 }
 0x509   :  { %v696_v49 = vsub.f32 2.0, %v695_v48 }
 0x50b   :  { %v697_v50 = vmul.f32 %v1273_v27, %v696_v49 }
 0x50d   :  { %v698_v52 = vmul.f32 %v1579_v5, %v697_v50 }
 0x50f   :  { %v703_v53 = vmul.f32 %v701_v45, %v698_v52 }
 0x511   :  { %v709_v55 = vadd.f32 %v708_v54, %v703_v53 }
 0x513   :  { %714 = vrot.lane.b32.xlu1 %v709_v55, %s1352_s25  ;;  %711 = vrot.lane.b32.xlu0 %v709_v55, %s1357_s27 }
 0x517   :  { %734 = vrot.lane.b32.xlu1 %v709_v55, %s1359_s28  ;;  %731 = vrot.lane.b32.xlu0 %v709_v55, %s1354_s26 }
 0x51b   :  { %748 = vperm.xlu1 %1240, %v130_v56   ;;  %425 = vperm.xlu0 %1239, %v130_v56  }
 0x51f   :  { %1241 = vset.pattern.permute.xlu0 %v1358_v44  ;;  %v1167_v44 = vpack.c.bf16 %v132_v43, %v131_v42 }
 0x521   :  { %1168 = vmatpush3.bf16.msra.mxu0 %v1167_v44 }
 0x522   :  { %1193 = vmatprep.subr.bf16.mxu0 %v1334_v3 }
 0x54e   :  { %v389_v1 = vpop.permute.xlu0 %388 }
 0x550   :  { %v396_v57 = vpop.permute.xlu1 %395 }
 0x552   :  { %v407_v5 = vpop.permute.xlu0 %406 }
 0x555   :  { %v402_v58 = vpop.permute.xlu1 %401 }
 0x556   :  { %v404_v0 = vmul.f32 %v402_v58, %v383_v38 }
 0x55a   :  { %v416_v59 = vpop.permute.xlu1 %415 }
 0x55f   :  { %v721_v60 = vpop.permute.xlu1 %720 }
 0x564   :  { %v727_v61 = vpop.permute.xlu1 %726 }
 0x565   :  { %v729_v19 = vmul.f32 %v727_v61, %v709_v55 }
 0x569   :  { %v740_v62 = vpop.permute.xlu1 %739 }
 0x56d   :  { %v386_v63 = vpop.permute.xlu1 %385 }
 0x56e   :  { %v392_v4 = vsel %vm391_vm11, %v386_v63, %v389_v1 }
 0x56f   :  { %v398_v8 = vmul.f32 %v396_v57, %v392_v4 }
 0x571   :  { %v410_v2 = vpop.permute.xlu1 %409  ;;  %v405_v10 = vadd.f32 %v404_v0, %v398_v8 }
 0x572   :  { %v413_v7 = vsel %vm412_vm12, %v407_v5, %v410_v2 }
 0x573   :  { %v418_v9 = vmul.f32 %v416_v59, %v413_v7 }
 0x575   :  { %v419_v12 = vadd.f32 %v418_v9, %v405_v10 }
 0x577   :  { %v420_v18 = vmax.f32 %v419_v12, 1e-30 }
 0x579   :  { %1274 = vlog2.f32 %v420_v18 }
 0x583   :  { %v1275_v28 = vpop.eup %1274 }
 0x584   :  { %v422_v29 = vmul.f32 0.6931472, %v1275_v28 }
 0x585   :  { %v712_v14 = vpop.permute.xlu0 %711  ;;  %v715_v15 = vpop.permute.xlu1 %714 }
 0x586   :  { %v717_v16 = vsel %vm391_vm11, %v712_v14, %v715_v15 }
 0x587   :  { %v723_v17 = vmul.f32 %v721_v60, %v717_v16 }
 0x589   :  { %v732_v20 = vpop.permute.xlu0 %731  ;;  %v735_v21 = vpop.permute.xlu1 %734  ;;  %v730_v23 = vadd.f32 %v729_v19, %v723_v17 }
 0x58a   :  { %v737_v22 = vsel %vm412_vm12, %v732_v20, %v735_v21 }
 0x58b   :  { %v742_v24 = vmul.f32 %v740_v62, %v737_v22 }
 0x58d   :  { %v743_v25 = vadd.f32 %v742_v24, %v730_v23 }
 0x58f   :  { %v744_v26 = vmax.f32 %v743_v25, 1e-30 }
 0x591   :  { %1276 = vlog2.f32 %v744_v26 }
 0x59a   :  { %v426_v30 = vpop.permute.xlu0 %425  ;;  %v749_v35 = vpop.permute.xlu1 %748 }
 0x59b   :  { %v1277_v31 = vpop.eup %1276  ;;  %v428_v32 = vmul.f32 %v426_v30, %v422_v29 }
 0x59c   :  { %v746_v33 = vmul.f32 0.6931472, %v1277_v31 }
 0x59d   :  { %v429_v34 = vmul.f32 1.442695, %v428_v32 }
 0x59e   :  { %v751_v36 = vmul.f32 %v749_v35, %v746_v33 }
 0x59f   :  { %1278 = vpow2.f32 %v429_v34 }
 0x5a0   :  { %v752_v37 = vmul.f32 1.442695, %v751_v36 }
 0x5a2   :  { %1280 = vpow2.f32 %v752_v37 }
 0x5a9   :  { %v1279_v38 = vpop.eup %1278 }
 0x5aa   :  { %v431_v39 = vsel %vm355_vm8, %v1279_v38, 0.0 }
 0x5ab   :  { %432 = vadd.xlane.f32.xlu1 %v431_v39 }
 0x5ac   :  { %v1281_v40 = vpop.eup %1280 }
 0x5ad   :  { %v754_v41 = vsel %vm355_vm8, %v1281_v40, 0.0 }
 0x5ae   :  { %755 = vadd.xlane.f32.xlu0 %v754_v41 }
 0x5bc   :  { %515 = vrot.lane.b32.xlu1 %v1574_v11, %s1345_s12 }
 0x5c0   :  { %835 = vrot.lane.b32.xlu1 %v1574_v11, %s1360_s29 }
 0x5c4   :  { %539 = vrot.lane.b32.xlu1 %v1438_v13, %s1360_s29  ;;  %512 = vrot.lane.b32.xlu0 %v1574_v11, %s1361_s30 }
 0x5c8   :  { %536 = vrot.lane.b32.xlu0 %v1438_v13, %s1362_s11 }
 0x5cc   :  { %857 = vrot.lane.b32.xlu0 %v1438_v13, %s1363_s0 }
 0x638   :  { %v433_v45 = vpop.xlane.xlu1 %432 }
 0x639   :  { %1282 = vrcp.f32 %v433_v45 }
 0x63b   :  { %v756_v11 = vpop.xlane.xlu0 %755 }
 0x63c   :  { %1284 = vrcp.f32 %v756_v11  ;;  %v516_v46 = vpop.permute.xlu1 %515 }
 0x63f   :  { %v513_v27 = vpop.permute.xlu0 %512 }
 0x640   :  { %v836_v48 = vpop.permute.xlu1 %835  ;;  %v518_v49 = vsel %vm250_vm2, %v513_v27, %v516_v46 }
 0x641   :  { %520 = vrot.lane.b32.xlu1 %v518_v49, %s1339_s3  ;;  %v838_v50 = vsel %vm250_vm2, %v836_v48, %v513_v27 }
 0x642   :  { %840 = vrot.lane.b32.xlu0 %v838_v50, %s1339_s3 }
 0x643   :  { %v1283_v51 = vpop.eup %1282  ;;  %v537_v3 = vpop.permute.xlu0 %536 }
 0x644   :  { %v435_v52 = vmul.f32 %v1283_v51, %v433_v45  ;;  %v540_v53 = vpop.permute.xlu1 %539 }
 0x645   :  { %v542_v13 = vsel %vm250_vm2, %v537_v3, %v540_v53 }
 0x646   :  { %v1285_v54 = vpop.eup %1284  ;;  %v436_v55 = vsub.f32 2.0, %v435_v52  ;;  %544 = vrot.lane.b32.xlu1 %v542_v13, %s1339_s3 }
 0x647   :  { %v758_v56 = vmul.f32 %v1285_v54, %v756_v11  ;;  %v858_v57 = vpop.permute.xlu0 %857 }
 0x648   :  { %v437_v58 = vmul.f32 %v1283_v51, %v436_v55  ;;  %v860_v59 = vsel %vm250_vm2, %v858_v57, %v537_v3 }
 0x649   :  { %v759_v60 = vsub.f32 2.0, %v758_v56  ;;  %862 = vrot.lane.b32.xlu0 %v860_v59, %s1339_s3 }
 0x64a   :  { %v438_v61 = vmul.f32 %v1279_v38, %v437_v58 }
 0x64b   :  { %v760_v62 = vmul.f32 %v1285_v54, %v759_v60 }
 0x64c   :  { %1068 = vmatmul.mubr.msk.f32.vlgmr.msra.gmra.mrb[4].mxu0 %vm256_vm3, %v438_v61 }
 0x64d   :  { %v761_v63 = vmul.f32 %v1281_v40, %v760_v62  ;;  %1195 = vmatpush3.bf16.msra.mxu0 %v1167_v44  ;;  %1109 = vmatprep.mubr.msk.f32.mxu0 %vm1335_vm0, %v1336_v6 }
 0x650   :  { %1110 = vmatmul.mubr.msk.f32.vlgmr.msra.gmra.mrb[6].mxu0 %vm256_vm3, %v761_v63 }
 0x6b3   :  { %v521_v1 = vpop.permute.xlu1 %520 }
 0x6b4   :  { %v523_v2 = vsel %vm256_vm3, %v518_v49, %v521_v1  ;;  %v841_v7 = vpop.permute.xlu0 %840 }
 0x6b5   :  { %525 = vrot.lane.b32.xlu1 %v523_v2, %s1340_s13  ;;  %v843_v8 = vsel %vm256_vm3, %v838_v50, %v841_v7 }
 0x6b8   :  { %v545_v4 = vpop.permute.xlu1 %544 }
 0x6b9   :  { %v547_v5 = vsel %vm256_vm3, %v542_v13, %v545_v4 }
 0x6ba   :  { %549 = vrot.lane.b32.xlu1 %v547_v5, %s1340_s13 }
 0x6bb   :  { %v863_v0 = vpop.permute.xlu0 %862 }
 0x6bc   :  { %v865_v6 = vsel %vm256_vm3, %v860_v59, %v863_v0 }
 0x6be   :  { %845 = vrot.lane.b32.xlu1 %v843_v8, %s1340_s13 }
 0x6c2   :  { %867 = vrot.lane.b32.xlu1 %v865_v6, %s1340_s13 }
 0x6c6   :  { %878 = vrot.lane.b32.xlu1 %v761_v63, %s1339_s3  ;;  %s893_s3 = sshll.u32 %s1364_s4, 4  ;;  %s894_s3 = int_to_ptr.vmem [resolvable:$true] %s893_s3 }
 0x6c7   :  { %s1286_s13 = scalar_lea.vmem %s894_s3, 32  ;;  %p1291_p1 = scmp.lt.s32.totalorder %s894_s3, %s894_s3 }
 0x6c8   :  { %p1287_p0 = scmp.ne.s32.totalorder %s894_s3, %s1286_s13  ;;  %p1292_p2 = scmp.lt.s32.totalorder %s1286_s13, %s1286_s13 }
 0x6ca   :  { %p1293_p3 = por %p1292_p2, %p1291_p1 }
 0x6cc   :  { %p1294_p4 = pnand %p1293_p3, %p1287_p0 }
 0x71f   :  { %v508_v9 = vpop.f32.mrb[4].mxu0 }
 0x720   :  { %v1069_v10 = vpop.f32.mrb[5].mxu0 }
 0x723   :  { %v831_v12 = vpop.f32.mrb[6].mxu0 }
 0x724   :  { %v1111_v14 = vpop.f32.mrb[7].mxu0 }
 0x727   :  { %v526_v15 = vpop.permute.xlu1 %525 }
 0x728   :  { %v528_v16 = vsel %vm40_vm1, %v523_v2, %v526_v15 }
 0x729   :  { %530 = vrot.lane.b32.xlu0 %v528_v16, %s1343_s1 }
 0x72c   :  { %v550_v17 = vpop.permute.xlu1 %549 }
 0x72d   :  { %v552_v18 = vsel %vm40_vm1, %v547_v5, %v550_v17 }
 0x72e   :  { %554 = vrot.lane.b32.xlu0 %v552_v18, %s1343_s1 }
 0x730   :  { %v846_v19 = vpop.permute.xlu1 %845 }
 0x731   :  { %v848_v20 = vsel %vm40_vm1, %v843_v8, %v846_v19 }
 0x732   :  { %850 = vrot.lane.b32.xlu0 %v848_v20, %s1343_s1 }
 0x734   :  { %v868_v21 = vpop.permute.xlu1 %867 }
 0x735   :  { %v870_v22 = vsel %vm40_vm1, %v865_v6, %v868_v21 }
 0x736   :  { %872 = vrot.lane.b32.xlu0 %v870_v22, %s1343_s1 }
 0x738   :  { %v879_v23 = vpop.permute.xlu1 %878 }
 0x739   :  { %v881_v24 = vsel %vm256_vm3, %v438_v61, %v879_v23 }
 0x73a   :  { %883 = vst.msk [vmem:[#allocation2] sm:$0x3] %vm882_vm13, %v881_v24 }
 0x73b   :  { %1297 = shalt.err (!%p1294_p4)
}
 0x73c   :  { %s1298_s16 = scalar_lea.hbm %s1672_s6, 32 }
 0x73d   :  { %p1299_p5 = scmp.ne.s32.totalorder %s1672_s6, %s1298_s16  ;;  %p1302_p6 = scmp.lt.u32.totalorder %s1298_s16, %s1672_s6 }
 0x73f   :  { %p1304_p7 = pnand %p1302_p6, %p1299_p5 }
 0x741   :  { %1307 = shalt.err (!%p1304_p7)
}
 0x742   :  { %896 = dma.vmem_to_hbm [thread:$0]  %s894_s3, 32, %s1672_s6, [#allocation3]  }
 0x743   :  { %s1365_s6 = smov [#allocation4]  }
 0x744   :  { %s903_s23 = sshll.u32 %s1365_s6, 4  ;;  %s904_s23 = int_to_ptr.vmem [resolvable:$true] %s903_s23 }
 0x745   :  { %s1308_s24 = scalar_lea.vmem %s904_s23, 32  ;;  %p1313_p9 = scmp.lt.s32.totalorder %s904_s23, %s904_s23 }
 0x746   :  { %p1309_p8 = scmp.ne.s32.totalorder %s904_s23, %s1308_s24  ;;  %p1314_p10 = scmp.lt.s32.totalorder %s1308_s24, %s1308_s24 }
 0x748   :  { %p1315_p11 = por %p1314_p10, %p1313_p9 }
 0x74a   :  { %p1316_p12 = pnand %p1315_p11, %p1309_p8 }
 0x79b   :  { %v531_v25 = vpop.permute.xlu0 %530 }
 0x79c   :  { %v533_v28 = vsel %vm267_vm6, %v528_v16, %v531_v25 }
 0x79d   :  { %v534_v29 = vmul.f32 %v533_v28, %v508_v9 }
 0x79f   :  { %v535_v34 = vsub.f32 1.0, %v534_v29 }
 0x7a0   :  { %v555_v26 = vpop.permute.xlu0 %554 }
 0x7a1   :  { %v557_v33 = vsel %vm267_vm6, %v552_v18, %v555_v26 }
 0x7a2   :  { %v558_v38 = vmul.f32 %v557_v33, %v508_v9 }
 0x7a4   :  { %v851_v30 = vpop.permute.xlu0 %850 }
 0x7a5   :  { %v853_v31 = vsel %vm267_vm6, %v848_v20, %v851_v30 }
 0x7a6   :  { %v854_v32 = vmul.f32 %v853_v31, %v831_v12 }
 0x7a8   :  { %v855_v35 = vsub.f32 1.0, %v854_v32  ;;  %v873_v36 = vpop.permute.xlu0 %872 }
 0x7a9   :  { %v875_v37 = vsel %vm267_vm6, %v870_v22, %v873_v36 }
 0x7aa   :  { %v856_v39 = vmul.f32 %v855_v35, %v535_v34  ;;  %v876_v40 = vmul.f32 %v875_v37, %v831_v12 }
 0x7ac   :  { %v877_v41 = vadd.f32 %v876_v40, %v558_v38  ;;  %v884_v42 = vmul.f32 %v856_v39, %v1522_v47 }
 0x7ae   :  { %v885_v43 = vadd.f32 %v884_v42, %v877_v41 }
 0x7b0   :  { %886 = vst [vmem:[#allocation4] sm:$0x3] %v885_v43 }
 0x7b1   :  { %1319 = shalt.err (!%p1316_p12)
}
 0x7b2   :  { %s1320_s12 = scalar_lea.hbm %s1673_s7, 32 }
 0x7b3   :  { %p1321_p13 = scmp.ne.s32.totalorder %s1673_s7, %s1320_s12  ;;  %p1324_p0 = scmp.lt.u32.totalorder %s1320_s12, %s1673_s7 }
 0x7b5   :  { %p1326_p1 = pnand %p1324_p0, %p1321_p13 }
 0x7b7   :  { %1329 = shalt.err (!%p1326_p1)
}
 0x7b8   :  { %906 = dma.vmem_to_hbm [thread:$0]  %s904_s23, 32, %s1673_s7, [#allocation5]  }
 0x7b9   :  { %1330 = dma.done.wait [#allocation3], 32  }
 0x7ba   :  { %1331 = vsyncadd [#allocation3], 4294967264 }
 0x7bb   :  { %1332 = dma.done.wait [#allocation5], 32  }
 0x7bc   :  { %1333 = vsyncadd [#allocation5], 4294967264 }
 0x7bd   :  { %913 = vsyncpa [#allocation3], 1 }
 0x7be   :  { %914 = vsyncpa [#allocation5], 1 }

</bundles_post_ra>
